<compile_context>
chip_gen: v7x
topology: tpu7x:2x2x1
jax: 0.10.0
libtpu: 0.0.40
codegen_flags: <defaults>
</compile_context>

<pallas_src>
import functools
import math

import jax
import jax.numpy as jnp
from jax.experimental import pallas as pl
from jax.experimental.pallas import tpu as pltpu


# ----------------------------------------------------------------------------
# Fused Pallas kernels (one (nb*H, W*C) activation tile per grid step)
# ----------------------------------------------------------------------------
def _block_kernel_s1(x_ref, w1_ref, b1_ref, a_ref, taps_ref, dwsh_ref,
                     w2_ref, b2_ref, o_ref, *, cmid, lane_sign):
    """stride=1 block (residual shortcut).

    x_ref   : (M, W*Cin)  bf16, M = nb*H, lanes = W*Cin (channel fastest)
    w1_ref  : (W*Cin, W*Cmid) bf16   g1 weights (shuffle + BN scale folded)
    b1_ref  : (1, W*Cmid)  f32       g1 BN shift
    a_ref   : (2, M, M)    bf16      row taps kh=0 / kh=2 (zero-pad rows, nb block-diag)
    taps_ref: (9, W*Cmid)  f32       dw taps * BN scale, tiled over W, col-masked
    dwsh_ref: (1, W*Cmid)  f32       dw BN shift
    w2_ref  : (W*Cmid, W*Cout) bf16  g2 weights (BN scale folded)
    b2_ref  : (1, W*Cout)  f32       g2 BN shift
    o_ref   : (M, W*Cout)  f32
    """
    x = x_ref[...]
    # g1 (grouped 1x1) + BN + ReLU; channel shuffle is folded into w1's columns.
    t = jnp.dot(x, w1_ref[...], preferred_element_type=jnp.float32)
    t = jnp.maximum(t + b1_ref[...], 0.0)                       # f32 (M, W*Cmid)
    tb = t.astype(jnp.bfloat16)

    lanes = t.shape[1]
    s_m1 = (lane_sign * cmid) % lanes       # roll so out[l] = v[l - Cmid]  (col w-1)
    s_p1 = (-lane_sign * cmid) % lanes      # roll so out[l] = v[l + Cmid]  (col w+1)

    # depthwise 3x3 pad=1 stride=1: rows via tiny 0/1 matmuls, cols via lane rolls.
    rows = (jnp.dot(a_ref[0], tb, preferred_element_type=jnp.float32),   # h-1
            t,                                                            # h
            jnp.dot(a_ref[1], tb, preferred_element_type=jnp.float32))   # h+1
    d = jnp.zeros_like(t)
    for kh in range(3):
        v = rows[kh]
        d = d + pltpu.roll(v, s_m1, 1) * taps_ref[kh * 3 + 0]
        d = d + v * taps_ref[kh * 3 + 1]
        d = d + pltpu.roll(v, s_p1, 1) * taps_ref[kh * 3 + 2]
    d = jnp.maximum(d + dwsh_ref[...], 0.0).astype(jnp.bfloat16)

    # g2 + BN + residual add + ReLU (fused epilogue, f32 on the VPU).
    y = jnp.dot(d, w2_ref[...], preferred_element_type=jnp.float32)
    y = y + b2_ref[...] + x.astype(jnp.float32)
    o_ref[...] = jnp.maximum(y, 0.0).astype(o_ref.dtype)


def _block_kernel_s2(x_ref, w1_ref, b1_ref, a_ref, dwb_ref, dwsh_ref,
                     w2_ref, b2_ref, avgb_ref, o_ref):
    """stride=2 block (AvgPool(3,2,1) + channel-concat shortcut).

    x_ref   : (M, W*Cin) bf16,  M = nb*H
    a_ref   : (3, Mo, M) bf16,  Mo = nb*Ho, stride-2 row select (+ zero pad)
    dwb_ref : (3, W*Cmid, Wo*Cmid) bf16   stride-2 col select with dw taps folded
    w2_ref  : (Wo*Cmid, Wo*Cstore) bf16   g2 weights placed in channels [0, Cout)
    avgb_ref: (3, W*Cin, Wo*Cstore) bf16  avgpool taps placed in channels [Cout, Cout+Cin)
    o_ref   : (Mo, Wo*Cstore) f32
    """
    x = x_ref[...]
    t = jnp.dot(x, w1_ref[...], preferred_element_type=jnp.float32)
    t = jnp.maximum(t + b1_ref[...], 0.0).astype(jnp.bfloat16)

    mo = a_ref.shape[1]
    d = jnp.zeros((mo, dwb_ref.shape[2]), jnp.float32)
    sc = jnp.zeros((mo, avgb_ref.shape[2]), jnp.float32)
    for kh in range(3):
        a = a_ref[kh]
        rt = jnp.dot(a, t, preferred_element_type=jnp.float32).astype(jnp.bfloat16)
        rx = jnp.dot(a, x, preferred_element_type=jnp.float32).astype(jnp.bfloat16)
        d = d + jnp.dot(rt, dwb_ref[kh], preferred_element_type=jnp.float32)
        sc = sc + jnp.dot(rx, avgb_ref[kh], preferred_element_type=jnp.float32)
    d = jnp.maximum(d + dwsh_ref[...], 0.0).astype(jnp.bfloat16)

    # g2 lands in channels [0,Cout), avgpool shortcut in [Cout,Cout+Cin); ReLU fused.
    y = jnp.dot(d, w2_ref[...], preferred_element_type=jnp.float32)
    o_ref[...] = jnp.maximum(y + b2_ref[...] + sc, 0.0).astype(o_ref.dtype)


# ----------------------------------------------------------------------------
# pltpu.roll sign-convention probe (tiny one-time kernel; removes any ambiguity
# about whether a positive shift moves lanes toward higher indices).
# ----------------------------------------------------------------------------
def _probe_roll_sign():
    def k(x_ref, o_ref):
        o_ref[...] = pltpu.roll(x_ref[...], 1, 1)

    x = jnp.arange(8 * 128, dtype=jnp.float32).reshape(8, 128)
    r = pl.pallas_call(k, out_shape=jax.ShapeDtypeStruct((8, 128), jnp.float32))(x)
    return 1 if bool(r[0, 1] == x[0, 0]) else -1


# ----------------------------------------------------------------------------
# Constant-matrix builders (one-time prepare step, outside the jitted path)
# ----------------------------------------------------------------------------
def _shuffle_perm(c, groups):
    # shuffled[new] = old[(new % groups) * (c // groups) + new // groups]
    cpg = c // groups
    idx = jnp.arange(c)
    return (idx % groups) * cpg + idx // groups


def _kron_eye(mat, reps):
    return jnp.kron(jnp.eye(reps, dtype=mat.dtype), mat)


def _row_select_mats(h_in, h_out, stride, taps):
    # A[k][i, h] = 1  iff  h == stride*i + kh - 1   (zero row => zero padding)
    i = jnp.arange(h_out)
    hh = jnp.arange(h_in)
    return jnp.stack([(hh[None, :] == (stride * i + kh - 1)[:, None]).astype(jnp.float32)
                      for kh in taps])


def _col_band_mats(tap_w, w_in, c_src, stride, w_out, c_blk, c_off):
    # B[kh][w*c_src + c, j*c_blk + c_off + c] = tap_w[kh*3+kw, c], w = stride*j+kw-1
    j = jnp.arange(w_out)
    c = jnp.arange(c_src)
    mats = []
    for kh in range(3):
        b = jnp.zeros((w_in * c_src, w_out * c_blk), jnp.float32)
        for kw in range(3):
            w_src = stride * j + kw - 1
            valid = ((w_src >= 0) & (w_src < w_in)).astype(jnp.float32)
            rows = jnp.clip(w_src, 0, w_in - 1)[:, None] * c_src + c[None, :]
            cols = j[:, None] * c_blk + c_off + c[None, :]
            vals = tap_w[kh * 3 + kw][None, :] * valid[:, None]
            b = b.at[rows, cols].add(vals)
        mats.append(b)
    return jnp.stack(mats)


# ----------------------------------------------------------------------------
# Parameter setup (deterministic; mirrors the PyTorch module's tensors)
# ----------------------------------------------------------------------------
def _bn_affine(key, c, eps=1e-5):
    k1, k2, k3, k4 = jax.random.split(key, 4)
    gamma = jax.random.uniform(k1, (c,), jnp.float32, 0.5, 1.5)
    beta = 0.1 * jax.random.normal(k2, (c,), jnp.float32)
    rmean = 0.1 * jax.random.normal(k3, (c,), jnp.float32)
    rvar = jax.random.uniform(k4, (c,), jnp.float32, 0.5, 1.5)
    scale = gamma / jnp.sqrt(rvar + eps)
    shift = beta - rmean * scale
    return scale, shift


def _block_diag_1x1(w, groups):
    """PyTorch grouped 1x1 weight (Cout, Cin/g, 1, 1) -> dense block-diag (Cin, Cout)."""
    cout, cin_g = w.shape[0], w.shape[1]
    cout_g = cout // groups
    cin = cin_g * groups
    full = jnp.zeros((cin, cout), jnp.float32)
    for g in range(groups):
        blk = w[g * cout_g:(g + 1) * cout_g, :, 0, 0]
        full = full.at[g * cin_g:(g + 1) * cin_g,
                       g * cout_g:(g + 1) * cout_g].set(blk.T)
    return full


def init_shufflenet_block(key, in_channels, out_channels, groups):
    mid = out_channels // 4
    ks = jax.random.split(key, 6)
    g1_w = 0.2 * jax.random.normal(ks[0], (mid, in_channels // groups, 1, 1), jnp.float32)
    dw_w = 0.2 * jax.random.normal(ks[1], (mid, 1, 3, 3), jnp.float32)
    g2_w = 0.2 * jax.random.normal(ks[2], (out_channels, mid // groups, 1, 1), jnp.float32)
    g1_scale, g1_shift = _bn_affine(ks[3], mid)
    dw_scale, dw_shift = _bn_affine(ks[4], mid)
    g2_scale, g2_shift = _bn_affine(ks[5], out_channels)
    return {
        "g1_W": _block_diag_1x1(g1_w, groups), "g1_scale": g1_scale, "g1_shift": g1_shift,
        "dw_w9": dw_w[:, 0].reshape(mid, 9).T,  # (9, C): tap index kh*3+kw
        "dw_scale": dw_scale, "dw_shift": dw_shift,
        "g2_W": _block_diag_1x1(g2_w, groups), "g2_scale": g2_scale, "g2_shift": g2_shift,
    }


def _pick_batch_tile(n, h, target_rows=256):
    """Largest divisor nb of n with nb*h <= target_rows (MXU M-blocking)."""
    nb = 1
    for d in range(1, n + 1):
        if n % d == 0 and d * h <= target_rows:
            nb = d
    return nb


# ----------------------------------------------------------------------------
# One-time prepare: fold module params + layout constants into kernel operands
# ----------------------------------------------------------------------------
def prepare_shufflenet_block(params, *, stride, groups, h, w, nb):
    mid = params["g1_W"].shape[1]
    cin = params["g1_W"].shape[0]
    cout = params["g2_W"].shape[1]
    h_out = (h - 1) // stride + 1
    w_out = (w - 1) // stride + 1

    perm = _shuffle_perm(mid, groups)                         # shuffle folded into g1
    w1s = params["g1_W"][:, perm] * params["g1_scale"][perm][None, :]
    w1_rep = _kron_eye(w1s, w).astype(jnp.bfloat16)           # (W*Cin, W*Cmid)
    b1_rep = jnp.tile(params["g1_shift"][perm], w)[None, :].astype(jnp.float32)

    wd9s = params["dw_w9"] * params["dw_scale"][None, :]      # (9, Cmid) taps * BN scale
    w2s = params["g2_W"] * params["g2_scale"][None, :]

    if stride == 1:
        assert cin == cout, "stride=1 residual path needs in_channels == out_channels"
        # row taps kh=0 / kh=2 (zero-pad rows), block-diagonal over the nb batch tile
        a_sel = _row_select_mats(h, h_out, 1, (0, 2))
        a_mats = jnp.stack([_kron_eye(a_sel[k], nb) for k in range(2)]).astype(jnp.bfloat16)

        # per-channel dw taps tiled over W; W-boundary masks folded into the taps
        lane = jnp.arange(w * mid)
        keep_l = (lane >= mid).astype(jnp.float32)             # kw=0 reads column w-1
        keep_r = (lane < (w - 1) * mid).astype(jnp.float32)    # kw=2 reads column w+1
        taps = jnp.stack([jnp.tile(wd9s[k], w) for k in range(9)])
        cmask = jnp.stack([keep_l if k % 3 == 0 else
                           (keep_r if k % 3 == 2 else jnp.ones_like(keep_l))
                           for k in range(9)])
        taps = (taps * cmask).astype(jnp.float32)              # (9, W*Cmid)
        dw_shift = jnp.tile(params["dw_shift"], w)[None, :].astype(jnp.float32)

        w2_rep = _kron_eye(w2s, w).astype(jnp.bfloat16)        # (W*Cmid, W*Cout)
        b2_rep = jnp.tile(params["g2_shift"], w)[None, :].astype(jnp.float32)

        operands = (w1_rep, b1_rep, a_mats, taps, dw_shift, w2_rep, b2_rep)
        meta = dict(stride=1, mid=mid, h_out=h_out, w_out=w_out, nb=nb,
                    c_store=cout, c_keep=cout)
    else:
        a_sel = _row_select_mats(h, h_out, 2, (0, 1, 2))       # (3, Ho, H)
        a_mats = jnp.stack([_kron_eye(a_sel[k], nb) for k in range(3)]).astype(jnp.bfloat16)
        dwb = _col_band_mats(wd9s, w, mid, 2, w_out, mid, 0).astype(jnp.bfloat16)
        dw_shift = jnp.tile(params["dw_shift"], w_out)[None, :].astype(jnp.float32)

        ctot = cout + cin
        # pad the stored channel count so the output lane width is a 128-multiple
        step = 128 // math.gcd(w_out, 128)
        c_store = ((ctot + step - 1) // step) * step
        blk = jnp.zeros((mid, c_store), jnp.float32).at[:, :cout].set(w2s)
        w2_rep = _kron_eye(blk, w_out).astype(jnp.bfloat16)    # (Wo*Cmid, Wo*Cstore)
        b2_rep = jnp.tile(
            jnp.zeros((c_store,), jnp.float32).at[:cout].set(params["g2_shift"]),
            w_out)[None, :].astype(jnp.float32)
        # AvgPool2d(3, 2, 1) with count_include_pad=True (PyTorch default): uniform 1/9.
        avg9 = jnp.full((9, cin), 1.0 / 9.0, jnp.float32)
        avg_mats = _col_band_mats(avg9, w, cin, 2, w_out, c_store, cout).astype(jnp.bfloat16)

        operands = (w1_rep, b1_rep, a_mats, dwb, dw_shift, w2_rep, b2_rep, avg_mats)
        meta = dict(stride=2, mid=mid, h_out=h_out, w_out=w_out, nb=nb,
                    c_store=c_store, c_keep=ctot)
    return operands, meta


# ----------------------------------------------------------------------------
# Forward pass: NHWC is the primary entry point; NCHW wrapper matches PyTorch
# ----------------------------------------------------------------------------
def shufflenet_block_apply(x_nhwc, consts, *, meta, lane_sign):
    n, h, w, cin = x_nhwc.shape
    nb = meta["nb"]
    assert n % nb == 0
    h_out, w_out = meta["h_out"], meta["w_out"]
    c_store, c_keep = meta["c_store"], meta["c_keep"]
    lin, lout = w * cin, w_out * c_store

    # lane-dense 2-D layout: rows = N*H (batch-major), lanes = W*C (channel fastest)
    x2 = x_nhwc.astype(jnp.bfloat16).reshape(n * h, lin)

    def const_spec(arr):
        nd = arr.ndim
        return pl.BlockSpec(arr.shape, lambda b, _nd=nd: (0,) * _nd)

    in_specs = [pl.BlockSpec((nb * h, lin), lambda b: (b, 0))]
    in_specs += [const_spec(c) for c in consts]

    if meta["stride"] == 1:
        kernel = functools.partial(_block_kernel_s1, cmid=meta["mid"],
                                   lane_sign=lane_sign)
    else:
        kernel = _block_kernel_s2

    out = pl.pallas_call(
        kernel,
        out_shape=jax.ShapeDtypeStruct((n * h_out, lout), jnp.float32),
        grid=(n // nb,),
        in_specs=in_specs,
        out_specs=pl.BlockSpec((nb * h_out, lout), lambda b: (b, 0)),
        compiler_params=pltpu.CompilerParams(
            dimension_semantics=("parallel",),
            vmem_limit_bytes=32 * 1024 * 1024),
    )(x2, *consts)

    out = out.reshape(n, h_out, w_out, c_store)
    if c_keep != c_store:
        out = out[..., :c_keep]                                # drop lane padding
    return out                                                 # NHWC


def shufflenet_block_forward_nchw(x_nchw, consts, *, meta, lane_sign):
    x = jnp.transpose(x_nchw, (0, 2, 3, 1)).astype(jnp.float32)
    y = shufflenet_block_apply(x, consts, meta=meta, lane_sign=lane_sign)
    return jnp.transpose(y, (0, 3, 1, 2))


# ----------------------------------------------------------------------------
# Pure-JAX reference (independent numerical check)
# ----------------------------------------------------------------------------
def _reference_forward(x_nchw, params, *, stride, groups):
    prec = jax.lax.Precision.HIGHEST
    x = jnp.transpose(x_nchw, (0, 2, 3, 1)).astype(jnp.float32)
    t = jnp.einsum("nhwc,cm->nhwm", x, params["g1_W"], precision=prec)
    t = jnp.maximum(t * params["g1_scale"] + params["g1_shift"], 0.0)
    n, h, w, c = t.shape
    cpg = c // groups
    t = t.reshape(n, h, w, groups, cpg).transpose(0, 1, 2, 4, 3).reshape(n, h, w, c)
    rhs = params["dw_w9"].reshape(3, 3, c)[:, :, None, :]
    d = jax.lax.conv_general_dilated(
        t, rhs, window_strides=(stride, stride), padding=((1, 1), (1, 1)),
        dimension_numbers=("NHWC", "HWIO", "NHWC"),
        feature_group_count=c, precision=prec)
    d = jnp.maximum(d * params["dw_scale"] + params["dw_shift"], 0.0)
    y = jnp.einsum("nhwm,mo->nhwo", d, params["g2_W"], precision=prec)
    y = y * params["g2_scale"] + params["g2_shift"]
    if stride == 2:
        cin = x.shape[-1]
        ones = jnp.full((3, 3, 1, cin), 1.0 / 9.0, jnp.float32)
        sc = jax.lax.conv_general_dilated(
            x, ones, window_strides=(2, 2), padding=((1, 1), (1, 1)),
            dimension_numbers=("NHWC", "HWIO", "NHWC"),
            feature_group_count=cin, precision=prec)
        out = jnp.maximum(jnp.concatenate([y, sc], axis=-1), 0.0)
    else:
        out = jnp.maximum(y + x, 0.0)
    return jnp.transpose(out, (0, 3, 1, 2))


def _check_close(y, r, tol=3e-2):
    # Tolerance sized for bf16 operand rounding across three chained matmuls
    # (f32 accumulation): elementwise |err| <= tol * (1 + |ref|).
    return bool(jnp.all(jnp.abs(y - r) <= tol * (1.0 + jnp.abs(r))))


# ----------------------------------------------------------------------------
if __name__ == "__main__":
    key = jax.random.PRNGKey(0)
    k_x2, k_x1, k_p2, k_p1 = jax.random.split(key, 4)

    lane_sign = _probe_roll_sign()            # pltpu.roll shift-sign calibration

    n, hh, ww = 2, 16, 16
    nb = _pick_batch_tile(n, hh)              # -> whole batch per grid step here

    # --- stride=2 block: in=16, out=32, groups=4 -> output (N, 32+16, H/2, W/2)
    in_c2, out_c2, groups2 = 16, 32, 4
    x2_nchw = jax.random.normal(k_x2, (n, in_c2, hh, ww), jnp.float32)
    p2 = init_shufflenet_block(k_p2, in_c2, out_c2, groups2)
    consts2, meta2 = prepare_shufflenet_block(p2, stride=2, groups=groups2,
                                              h=hh, w=ww, nb=nb)
    fwd2 = jax.jit(functools.partial(shufflenet_block_forward_nchw,
                                     meta=meta2, lane_sign=lane_sign))
    y2 = fwd2(x2_nchw, consts2)
    jax.block_until_ready(y2)
    assert y2.shape == (n, out_c2 + in_c2, hh // 2, ww // 2), y2.shape
    assert float(jnp.min(y2)) >= 0.0
    x2_q = x2_nchw.astype(jnp.bfloat16).astype(jnp.float32)   # kernel sees bf16 input
    r2 = _reference_forward(x2_q, p2, stride=2, groups=groups2)
    assert _check_close(y2, r2)

    # --- stride=1 block: in=out=32, groups=4 -> residual path, output (N, 32, H, W)
    in_c1, out_c1, groups1 = 32, 32, 4
    x1_nchw = jax.random.normal(k_x1, (n, in_c1, hh, ww), jnp.float32)
    p1 = init_shufflenet_block(k_p1, in_c1, out_c1, groups1)
    consts1, meta1 = prepare_shufflenet_block(p1, stride=1, groups=groups1,
                                              h=hh, w=ww, nb=nb)
    fwd1 = jax.jit(functools.partial(shufflenet_block_forward_nchw,
                                     meta=meta1, lane_sign=lane_sign))
    y1 = fwd1(x1_nchw, consts1)
    jax.block_until_ready(y1)
    assert y1.shape == (n, out_c1, hh, ww), y1.shape
    assert float(jnp.min(y1)) >= 0.0
    x1_q = x1_nchw.astype(jnp.bfloat16).astype(jnp.float32)
    r1 = _reference_forward(x1_q, p1, stride=1, groups=groups1)
    assert _check_close(y1, r1)

    print("KERNEL_OK")
</pallas_src>

<mosaic_0001>
module attributes {stable_mosaic.version = 11 : i64} {
  func.func @k(%arg0: memref<8x128xf32, #tpu.memory_space<vmem>>, %arg1: memref<8x128xf32, #tpu.memory_space<vmem>>) attributes {dimension_semantics = [], scalar_prefetch = 0 : i64, scratch_operands = 0 : i64, tpu.core_type = #tpu.core_type<tc>} {
    %c0 = arith.constant 0 : index
    %c0_0 = arith.constant 0 : index
    %0 = vector.load %arg0[%c0, %c0_0] : memref<8x128xf32, #tpu.memory_space<vmem>>, vector<8x128xf32>
    %c1_i32 = arith.constant 1 : i32
    %1 = tpu.dynamic_rotate %0 by %c1_i32 dim 1 : vector<8x128xf32>, i32 -> vector<8x128xf32>
    %c0_1 = arith.constant 0 : index
    %c0_2 = arith.constant 0 : index
    %2 = vector.load %arg1[%c0_1, %c0_2] : memref<8x128xf32, #tpu.memory_space<vmem>>, vector<8x128xf32>
    tpu.vector_store %arg1[%c0_1, %c0_2], %1 {strides = array<i32>} : memref<8x128xf32, #tpu.memory_space<vmem>>, vector<8x128xf32>,
    return
  }
}

</mosaic_0001>

<bundles_post_ra>
// kernel: tpu_custom_call.1
= control target key start
LH: loop header
LB: loop body
LE: loop exit
PB: predicated region body
PF: predicated region fallthrough
CT: control target
= control target key end

     0   :  { %6 = vsyncpa [#allocation3], 0  ;;  %s128_s0 = inlined_call_operand.hbm [shape: f32[8,128], index: 0, kind: input, shape index: {}]   ;;  %s129_s1 = inlined_call_operand.hbm [shape: f32[8,128], index: 1, kind: output, shape index: {}]  }
   0x1   :  { %7 = vsyncpa [#allocation4], 0  ;;  %s91_s6 = smov [#allocation2]   ;;  %s43_s10 = scalar_lea.hbm %s128_s0, 128 }
   0x2   :  { %s14_s7 = sshll.u32 %s91_s6, 4  ;;  %p44_p0 = scmp.ne.s32.totalorder %s128_s0, %s43_s10  ;;  %s15_s7 = int_to_ptr.vmem [resolvable:$true] %s14_s7 }
   0x3   :  { %p47_p1 = scmp.lt.u32.totalorder %s43_s10, %s128_s0 }
   0x5   :  { %p49_p2 = pnand %p47_p1, %p44_p0 }
   0x7   :  { %52 = shalt.err (!%p49_p2)
}
   0x8   :  { %s53_s15 = scalar_lea.vmem %s15_s7, 128  ;;  %p58_p4 = scmp.lt.s32.totalorder %s15_s7, %s15_s7 }
   0x9   :  { %p54_p3 = scmp.ne.s32.totalorder %s15_s7, %s53_s15  ;;  %p59_p5 = scmp.lt.s32.totalorder %s53_s15, %s53_s15 }
   0xb   :  { %p60_p6 = por %p59_p5, %p58_p4 }
   0xd   :  { %p61_p7 = pnand %p60_p6, %p54_p3 }
   0xf   :  { %64 = shalt.err (!%p61_p7)
}
  0x10   :  { %17 = dma.hbm_to_vmem [thread:$0]  %s128_s0, 128, %s15_s7, [#allocation3]  }
  0x11   :  { %87 = dma.done.wait [#allocation3], 128  }
  0x12   :  { %88 = vsyncadd [#allocation3], 4294967168  ;;  %v21_v0 = vld [vmem:[#allocation2] sm:$0xff]  ;;  %s92_s18 = smov 1   ;;  %s93_s19 = smov [#allocation5]  }
  0x13   :  { %22 = vrot.lane.b32.xlu0 %v21_v0, %s92_s18  ;;  %s31_s20 = sshll.u32 %s93_s19, 4  ;;  %s32_s20 = int_to_ptr.vmem [resolvable:$true] %s31_s20 }
  0x14   :  { %s65_s21 = scalar_lea.vmem %s32_s20, 128  ;;  %p70_p9 = scmp.lt.s32.totalorder %s32_s20, %s32_s20 }
  0x15   :  { %p66_p8 = scmp.ne.s32.totalorder %s32_s20, %s65_s21  ;;  %p71_p10 = scmp.lt.s32.totalorder %s65_s21, %s65_s21 }
  0x17   :  { %p72_p11 = por %p71_p10, %p70_p9 }
  0x19   :  { %p73_p12 = pnand %p72_p11, %p66_p8 }
  0x85   :  { %v23_v1 = vpop.permute.xlu0 %22 }
  0x86   :  { %24 = vst [vmem:[#allocation5] sm:$0xff] %v23_v1 }
  0x87   :  { %76 = shalt.err (!%p73_p12)
}
  0x88   :  { %s77_s0 = scalar_lea.hbm %s129_s1, 128 }
  0x89   :  { %p78_p13 = scmp.ne.s32.totalorder %s129_s1, %s77_s0  ;;  %p81_p0 = scmp.lt.u32.totalorder %s77_s0, %s129_s1 }
  0x8b   :  { %p83_p1 = pnand %p81_p0, %p78_p13 }
  0x8d   :  { %86 = shalt.err (!%p83_p1)
}
  0x8e   :  { %34 = dma.vmem_to_hbm [thread:$0]  %s32_s20, 128, %s129_s1, [#allocation4]  }
  0x8f   :  { %89 = dma.done.wait [#allocation4], 128  }
  0x90   :  { %90 = vsyncadd [#allocation4], 4294967168 }
  0x91   :  { %38 = vsyncpa [#allocation3], 1 }
  0x92   :  { %39 = vsyncpa [#allocation4], 1 }

</bundles_post_ra>
